<compile_context>
chip_gen: v7x
topology: tpu7x:2x2x1
jax: 0.10.0
libtpu: 0.0.40
codegen_flags: <defaults>
</compile_context>

<pallas_src>
import math
from functools import partial

import jax
import jax.numpy as jnp
from jax.experimental import pallas as pl
from jax.experimental.pallas import tpu as pltpu


# --------------------------------------------------------------------------- #
# Kernel 1: fused Q/K/V projections, lane-dense (B, S, D) outputs              #
# --------------------------------------------------------------------------- #
def _qkv_proj_kernel(*args, shared_x: bool, q_scale: float, compute_dtype):
    if shared_x:
        (x_ref, wq_ref, wk_ref, wv_ref, bq_ref, bk_ref, bv_ref,
         q_out, k_out, v_out) = args
        x = x_ref[0].astype(compute_dtype)          # one activation DMA stream
        xq = xk = xv = x
    else:
        (xq_ref, xk_ref, xv_ref, wq_ref, wk_ref, wv_ref, bq_ref, bk_ref, bv_ref,
         q_out, k_out, v_out) = args
        xq = xq_ref[0].astype(compute_dtype)
        xk = xk_ref[0].astype(compute_dtype)
        xv = xv_ref[0].astype(compute_dtype)

    def proj(x, w_ref, b_ref, o_ref, scale):
        y = jnp.dot(x, w_ref[...], preferred_element_type=jnp.float32) + b_ref[...]
        if scale != 1.0:                             # fold 1/sqrt(d_k) into Q
            y = y * scale
        o_ref[0] = y.astype(o_ref.dtype)             # lane-dense store, no relayout

    proj(xq, wq_ref, bq_ref, q_out, q_scale)
    proj(xk, wk_ref, bk_ref, k_out, 1.0)
    proj(xv, wv_ref, bv_ref, v_out, 1.0)


# --------------------------------------------------------------------------- #
# Kernel 2: flash-style attention (online softmax) with block skipping         #
# --------------------------------------------------------------------------- #
def _flash_attn_kernel(blk_ref, q_ref, k_ref, v_ref, mask_ref, o_ref,
                       qh_scr, m_scr, l_scr, acc_scr,
                       *, h: int, d_k: int, compute_dtype, approx_recip: bool):
    qi = pl.program_id(1)
    ki = pl.program_id(2)
    nk = pl.num_programs(2)
    tq = q_ref.shape[1]
    tkv = k_ref.shape[1]

    @pl.when(ki == 0)
    def _init():
        m_scr[...] = jnp.full(m_scr.shape, -jnp.inf, dtype=m_scr.dtype)
        l_scr[...] = jnp.zeros(l_scr.shape, dtype=l_scr.dtype)
        acc_scr[...] = jnp.zeros(acc_scr.shape, dtype=acc_scr.dtype)
        # Head-split the (already 1/sqrt(d_k)-scaled) Q tile ONCE per q tile.
        qh_scr[...] = q_ref[0].reshape(tq, h, d_k).transpose(1, 0, 2)

    # Skip fully-masked (q, kv) blocks entirely (scores, exp, PV all elided).
    @pl.when(blk_ref[qi, ki] > 0)
    def _compute():
        kh = k_ref[0].reshape(tkv, h, d_k).transpose(1, 0, 2)          # (h, tkv, d_k)
        s = jnp.einsum('hqd,hkd->hqk', qh_scr[...], kh,
                       preferred_element_type=jnp.float32)              # (h, tq, tkv)

        # masked_fill_(mask == 0, -1e9) as a single additive bias computed on the
        # 2-D (tq, tkv) tile, then one VPU add on the (h, tq, tkv) scores.
        bias = jnp.where(mask_ref[0, 0] == 0, jnp.float32(-1e9), jnp.float32(0.0))
        s = s + bias[None, :, :]

        # Online softmax (all f32 -- v5e has no bf16 VPU/EUP).
        m_prev = m_scr[...]
        m_new = jnp.maximum(m_prev, jnp.max(s, axis=-1, keepdims=True))
        alpha = jnp.exp(m_prev - m_new)
        p = jnp.exp(s - m_new)
        l_scr[...] = alpha * l_scr[...] + jnp.sum(p, axis=-1, keepdims=True)

        vh = v_ref[0].reshape(tkv, h, d_k).transpose(1, 0, 2)           # (h, tkv, d_k)
        acc_scr[...] = alpha * acc_scr[...] + jnp.einsum(
            'hqk,hkd->hqd', p.astype(compute_dtype), vh,
            preferred_element_type=jnp.float32)
        m_scr[...] = m_new

    @pl.when(ki == nk - 1)
    def _finalize():
        inv_l = pl.reciprocal(l_scr[...], approx=approx_recip)          # EUP on fast path
        ctx = acc_scr[...] * inv_l                                      # (h, tq, d_k)
        # One relayout per output tile (not per kv step); output store is lane-dense.
        o_ref[0] = ctx.transpose(1, 0, 2).reshape(tq, h * d_k).astype(o_ref.dtype)


# --------------------------------------------------------------------------- #
# Kernel 3: generic N-tiled linear (used for the w_o output projection)        #
# --------------------------------------------------------------------------- #
def _linear_kernel(x_ref, w_ref, b_ref, o_ref, *, compute_dtype):
    x = x_ref[0].astype(compute_dtype)
    y = jnp.dot(x, w_ref[...], preferred_element_type=jnp.float32) + b_ref[...]
    o_ref[0] = y.astype(o_ref.dtype)


# --------------------------------------------------------------------------- #
# Wrapper                                                                       #
# --------------------------------------------------------------------------- #
def _pick_tile(n: int, target: int, align: int) -> int:
    """Largest divisor of n that is <= target and a multiple of `align`,
    falling back to the full extent (always a legal block size)."""
    if n <= target:
        return n
    for t in range(target, align - 1, -align):
        if n % t == 0:
            return t
    return n   # NOTE: full-extent fallback can inflate VMEM for odd S; see budget check.


def _compiler_params(dimension_semantics, est_vmem_bytes):
    kwargs = dict(dimension_semantics=dimension_semantics)
    # v5e's scoped-VMEM default is only 16 MiB; request more whenever the working
    # set is non-trivial, capped well under v7x's 64 MiB physical VMEM.
    if est_vmem_bytes > 8 * 1024 * 1024:
        kwargs["vmem_limit_bytes"] = int(min(max(2 * est_vmem_bytes, 24 * 1024 * 1024),
                                             48 * 1024 * 1024))
    return pltpu.CompilerParams(**kwargs)


def _tiled_linear(x, w_t, bias, *, out_dtype, compute_dtype, ts, tn):
    """y = x @ w_t + bias, tiled over (batch, out-features, seq)."""
    B, S, D_in = x.shape
    D_out = w_t.shape[1]
    ns, nn = S // ts, D_out // tn
    itm = jnp.dtype(compute_dtype).itemsize
    est = 2 * (ts * D_in * x.dtype.itemsize + D_in * tn * w_t.dtype.itemsize
               + tn * 4 + ts * tn * jnp.dtype(out_dtype).itemsize)
    return pl.pallas_call(
        partial(_linear_kernel, compute_dtype=compute_dtype),
        out_shape=jax.ShapeDtypeStruct((B, S, D_out), out_dtype),
        grid_spec=pltpu.PrefetchScalarGridSpec(
            num_scalar_prefetch=0,
            grid=(B, nn, ns),
            in_specs=[pl.BlockSpec((1, ts, D_in), lambda b, nj, si: (b, si, 0)),
                      pl.BlockSpec((D_in, tn), lambda b, nj, si: (0, nj)),
                      pl.BlockSpec((1, tn), lambda b, nj, si: (0, nj))],
            out_specs=pl.BlockSpec((1, ts, tn), lambda b, nj, si: (b, si, nj))),
        compiler_params=_compiler_params(("parallel", "parallel", "parallel"), est),
    )(x, w_t, bias)


def multi_head_attention_pallas(q, k, v, mask, params, h: int, *,
                                compute_dtype=jnp.bfloat16,
                                block_seq=None, block_q=None, block_kv=None,
                                block_n=None):
    """q, k, v: (B, S, D); mask: (Bm, 1, S, S) with Bm in {1, B} (or None);
    params: dict with 'wq','bq','wk','bk','wv','bv','wo','bo' (PyTorch Linear layout)."""
    B, S, D = q.shape
    assert D % h == 0, "d_model not divisible by h"
    d_k = D // h
    cdt = jnp.dtype(compute_dtype)
    itm = cdt.itemsize

    if mask is None:
        mask = jnp.ones((1, 1, S, S), jnp.int8)
    assert mask.ndim == 4 and mask.shape[1] == 1 and mask.shape[2:] == (S, S)
    mask_i8 = (mask != 0).astype(jnp.int8)          # int8: 4x less mask bandwidth
    Bm = mask_i8.shape[0]
    assert Bm in (1, B)

    # PyTorch Linear weights (out,in) -> (in,out); matmul operands in compute dtype,
    # biases stay f32 (added post-accumulate).
    wq_t = params['wq'].T.astype(cdt)
    wk_t = params['wk'].T.astype(cdt)
    wv_t = params['wv'].T.astype(cdt)
    wo_t = params['wo'].T.astype(cdt)
    bq = params['bq'].reshape(1, D).astype(jnp.float32)
    bk = params['bk'].reshape(1, D).astype(jnp.float32)
    bv = params['bv'].reshape(1, D).astype(jnp.float32)
    bo = params['bo'].reshape(1, D).astype(jnp.float32)

    scale = 1.0 / math.sqrt(d_k)

    # ------------------------- tile selection --------------------------------- #
    ts = block_seq or _pick_tile(S, 256, 8)                       # projection seq tile
    # N-tile the DxD weights so they never need to be fully VMEM-resident.
    tn = block_n or (D if 6 * D * D * itm <= (8 << 20) else _pick_tile(D, 256, 128))
    tq = block_q or _pick_tile(S, 256, 8)                         # 256 fills v6e/v7x MXU
    tkv = block_kv or _pick_tile(S, 256, 128)

    def attn_vmem(tq_, tkv_):
        blocks = 2 * (2 * tq_ * D * itm + 2 * tkv_ * D * itm + tq_ * tkv_)
        scratch = h * tq_ * d_k * (itm + 4) + 2 * h * tq_ * 128 * 4
        temps = 2 * h * tq_ * tkv_ * 4                            # f32 s and p
        return blocks + scratch + temps

    budget = 24 << 20                                             # safe on v7x's 64 MiB
    while attn_vmem(tq, tkv) > budget and tkv >= 256 and (tkv // 2) % 128 == 0:
        tkv //= 2                                                 # shrink kv tile first
    while attn_vmem(tq, tkv) > budget and tq >= 128 and (tq // 2) % 8 == 0:
        tq //= 2

    ns, nn = S // ts, D // tn
    nq, nkb = S // tq, S // tkv

    # -------------- kernel 1: Q/K/V projections (lane-dense outputs) ---------- #
    shared_x = (q is k) and (k is v)                              # self-attention: 1 x stream
    x_spec = pl.BlockSpec((1, ts, D), lambda b, nj, si: (b, si, 0))
    w_spec = pl.BlockSpec((D, tn), lambda b, nj, si: (0, nj))
    b_spec = pl.BlockSpec((1, tn), lambda b, nj, si: (0, nj))
    o_spec = pl.BlockSpec((1, ts, tn), lambda b, nj, si: (b, si, nj))

    n_x = 1 if shared_x else 3
    x_itm = q.dtype.itemsize
    proj_est = 2 * (n_x * ts * D * x_itm + 3 * D * tn * itm + 3 * tn * 4 + 3 * ts * tn * itm)
    x_inputs = (q,) if shared_x else (q, k, v)

    qs, kk, vv = pl.pallas_call(
        partial(_qkv_proj_kernel, shared_x=shared_x, q_scale=scale, compute_dtype=cdt),
        out_shape=tuple(jax.ShapeDtypeStruct((B, S, D), cdt) for _ in range(3)),
        grid_spec=pltpu.PrefetchScalarGridSpec(
            num_scalar_prefetch=0,
            grid=(B, nn, ns),                     # weight tile constant across inner seq axis
            in_specs=[x_spec] * n_x + [w_spec] * 3 + [b_spec] * 3,
            out_specs=[o_spec, o_spec, o_spec]),
        compiler_params=_compiler_params(("parallel", "parallel", "parallel"), proj_est),
    )(*x_inputs, wq_t, wk_t, wv_t, bq, bk, bv)

    # -------------- kernel 2: flash attention with block skipping ------------- #
    # Block occupancy map (nq, nkb): 0 = fully masked block (skip), 1 = has work.
    blk_any = (mask_i8[:, 0].reshape(Bm, nq, tq, nkb, tkv)
               .max(axis=(0, 2, 4)) > 0).astype(jnp.int32)

    qs_spec = pl.BlockSpec((1, tq, D), lambda b, qi, ki, blk: (b, qi, 0))
    kv_spec = pl.BlockSpec((1, tkv, D), lambda b, qi, ki, blk: (b, ki, 0))
    if Bm == 1:   # batch-invariant mask: constant batch index -> single DMA stream
        mask_spec = pl.BlockSpec((1, 1, tq, tkv), lambda b, qi, ki, blk: (0, 0, qi, ki))
    else:
        mask_spec = pl.BlockSpec((1, 1, tq, tkv), lambda b, qi, ki, blk: (b, 0, qi, ki))
    ctx_spec = pl.BlockSpec((1, tq, D), lambda b, qi, ki, blk: (b, qi, 0))

    ctx = pl.pallas_call(
        partial(_flash_attn_kernel, h=h, d_k=d_k, compute_dtype=cdt,
                approx_recip=(cdt != jnp.dtype(jnp.float32))),
        out_shape=jax.ShapeDtypeStruct((B, S, D), cdt),
        grid_spec=pltpu.PrefetchScalarGridSpec(
            num_scalar_prefetch=1,
            grid=(B, nq, nkb),                                   # kv reduction axis last
            in_specs=[qs_spec, kv_spec, kv_spec, mask_spec],
            out_specs=ctx_spec,
            scratch_shapes=[pltpu.VMEM((h, tq, d_k), cdt),       # head-split Q (per q tile)
                            pltpu.VMEM((h, tq, 1), jnp.float32),  # running max
                            pltpu.VMEM((h, tq, 1), jnp.float32),  # running denom
                            pltpu.VMEM((h, tq, d_k), jnp.float32)]),  # accumulator
        compiler_params=_compiler_params(("parallel", "parallel", "arbitrary"),
                                         attn_vmem(tq, tkv)),
    )(blk_any, qs, kk, vv, mask_i8)

    # -------------- kernel 3: output projection (w_o), N-tiled ---------------- #
    return _tiled_linear(ctx, wo_t, bo, out_dtype=q.dtype, compute_dtype=cdt,
                         ts=ts, tn=tn)


# --------------------------------------------------------------------------- #
# Pure-JAX reference (mirrors the PyTorch forward exactly)                      #
# --------------------------------------------------------------------------- #
def multi_head_attention_ref(q, k, v, mask, params, h: int):
    B, S, D = q.shape
    d_k = D // h
    lin = lambda x, w, b: x @ w.T + b
    Q = lin(q, params['wq'], params['bq']).reshape(B, S, h, d_k).transpose(0, 2, 1, 3)
    K = lin(k, params['wk'], params['bk']).reshape(B, S, h, d_k).transpose(0, 2, 1, 3)
    V = lin(v, params['wv'], params['bv']).reshape(B, S, h, d_k).transpose(0, 2, 1, 3)
    scores = (Q @ K.transpose(0, 1, 3, 2)) / math.sqrt(d_k)
    scores = jnp.where(mask == 0, -1e9, scores)
    attn = jax.nn.softmax(scores, axis=-1)
    x = (attn @ V).transpose(0, 2, 1, 3).reshape(B, S, D)
    return lin(x, params['wo'], params['bo'])


if __name__ == "__main__":
    B, S, D, H = 2, 8, 32, 4   # batch, seq, d_model, heads  (d_k = 8)

    key = jax.random.PRNGKey(0)
    ks = jax.random.split(key, 12)
    wscale = 1.0 / math.sqrt(D)
    params = {
        'wq': jax.random.normal(ks[0], (D, D), jnp.float32) * wscale,
        'bq': jax.random.normal(ks[1], (D,), jnp.float32) * 0.1,
        'wk': jax.random.normal(ks[2], (D, D), jnp.float32) * wscale,
        'bk': jax.random.normal(ks[3], (D,), jnp.float32) * 0.1,
        'wv': jax.random.normal(ks[4], (D, D), jnp.float32) * wscale,
        'bv': jax.random.normal(ks[5], (D,), jnp.float32) * 0.1,
        'wo': jax.random.normal(ks[6], (D, D), jnp.float32) * wscale,
        'bo': jax.random.normal(ks[7], (D,), jnp.float32) * 0.1,
    }

    q = jax.random.normal(ks[8], (B, S, D), jnp.float32)
    k = jax.random.normal(ks[9], (B, S, D), jnp.float32)
    v = jax.random.normal(ks[10], (B, S, D), jnp.float32)

    causal = jnp.tril(jnp.ones((S, S), jnp.int32))
    mask1 = causal[None, None, :, :]                    # (1, 1, S, S) shared mask
    maskB = jnp.broadcast_to(mask1, (B, 1, S, S))       # (B, 1, S, S) per-batch mask

    # Path 1: cross-attention style inputs (distinct q, k, v), per-batch mask,
    #         bit-careful f32 compute (exact reciprocal).
    ref_cross = multi_head_attention_ref(q, k, v, maskB, params, H)
    out_f32 = jax.block_until_ready(
        multi_head_attention_pallas(q, k, v, maskB, params, H,
                                    compute_dtype=jnp.float32))

    # Path 2: self-attention (q is k is v -> single activation DMA stream),
    #         batch-invariant mask, bf16 fast path.
    ref_self = multi_head_attention_ref(q, q, q, mask1, params, H)
    out_bf16 = jax.block_until_ready(
        multi_head_attention_pallas(q, q, q, mask1, params, H,
                                    compute_dtype=jnp.bfloat16))

    assert out_f32.shape == (B, S, D) and out_bf16.shape == (B, S, D)
    err_f32 = float(jnp.max(jnp.abs(out_f32 - ref_cross)))
    err_b16 = float(jnp.max(jnp.abs(out_bf16 - ref_self)))
    # f32 path: only online-softmax reassociation / pre-scaled Q rounding differences.
    assert jnp.allclose(out_f32, ref_cross, atol=5e-3, rtol=5e-3), f"f32 max err {err_f32}"
    # bf16 matmul operands -> looser tolerance vs the pure-f32 reference.
    assert jnp.allclose(out_bf16, ref_self, atol=8e-2, rtol=5e-2), f"bf16 max err {err_b16}"

    print("KERNEL_OK")
</pallas_src>

<mosaic_0001>
module attributes {stable_mosaic.version = 11 : i64} {
  func.func @_qkv_proj_kernel(%arg0: i32, %arg1: i32, %arg2: i32, %arg3: memref<1x8x32xf32, #tpu.memory_space<vmem>>, %arg4: memref<1x8x32xf32, #tpu.memory_space<vmem>>, %arg5: memref<1x8x32xf32, #tpu.memory_space<vmem>>, %arg6: memref<32x32xf32, #tpu.memory_space<vmem>>, %arg7: memref<32x32xf32, #tpu.memory_space<vmem>>, %arg8: memref<32x32xf32, #tpu.memory_space<vmem>>, %arg9: memref<1x32xf32, #tpu.memory_space<vmem>>, %arg10: memref<1x32xf32, #tpu.memory_space<vmem>>, %arg11: memref<1x32xf32, #tpu.memory_space<vmem>>, %arg12: memref<1x8x32xf32, #tpu.memory_space<vmem>>, %arg13: memref<1x8x32xf32, #tpu.memory_space<vmem>>, %arg14: memref<1x8x32xf32, #tpu.memory_space<vmem>>) attributes {dimension_semantics = [#tpu.dimension_semantics<parallel>, #tpu.dimension_semantics<parallel>, #tpu.dimension_semantics<parallel>], iteration_bounds = array<i64: 2, 1, 1>, scalar_prefetch = 0 : i64, scratch_operands = 0 : i64, tpu.core_type = #tpu.core_type<tc>, window_params = [{transform_indices = @transform_0, window_bounds = array<i64: 1, 8, 32>}, {transform_indices = @transform_1, window_bounds = array<i64: 1, 8, 32>}, {transform_indices = @transform_2, window_bounds = array<i64: 1, 8, 32>}, {transform_indices = @transform_3, window_bounds = array<i64: 32, 32>}, {transform_indices = @transform_4, window_bounds = array<i64: 32, 32>}, {transform_indices = @transform_5, window_bounds = array<i64: 32, 32>}, {transform_indices = @transform_6, window_bounds = array<i64: 1, 32>}, {transform_indices = @transform_7, window_bounds = array<i64: 1, 32>}, {transform_indices = @transform_8, window_bounds = array<i64: 1, 32>}, {transform_indices = @transform_9, window_bounds = array<i64: 1, 8, 32>}, {transform_indices = @transform_10, window_bounds = array<i64: 1, 8, 32>}, {transform_indices = @transform_11, window_bounds = array<i64: 1, 8, 32>}]} {
    %c0 = arith.constant 0 : index
    %c0_0 = arith.constant 0 : index
    %c0_1 = arith.constant 0 : index
    %0 = vector.load %arg3[%c0, %c0_0, %c0_1] : memref<1x8x32xf32, #tpu.memory_space<vmem>>, vector<1x8x32xf32>
    %1 = vector.shape_cast %0 : vector<1x8x32xf32> to vector<8x32xf32>
    %c0_2 = arith.constant 0 : index
    %c0_3 = arith.constant 0 : index
    %c0_4 = arith.constant 0 : index
    %2 = vector.load %arg4[%c0_2, %c0_3, %c0_4] : memref<1x8x32xf32, #tpu.memory_space<vmem>>, vector<1x8x32xf32>
    %3 = vector.shape_cast %2 : vector<1x8x32xf32> to vector<8x32xf32>
    %c0_5 = arith.constant 0 : index
    %c0_6 = arith.constant 0 : index
    %c0_7 = arith.constant 0 : index
    %4 = vector.load %arg5[%c0_5, %c0_6, %c0_7] : memref<1x8x32xf32, #tpu.memory_space<vmem>>, vector<1x8x32xf32>
    %5 = vector.shape_cast %4 : vector<1x8x32xf32> to vector<8x32xf32>
    %c0_8 = arith.constant 0 : index
    %c0_9 = arith.constant 0 : index
    %6 = vector.load %arg6[%c0_8, %c0_9] : memref<32x32xf32, #tpu.memory_space<vmem>>, vector<32x32xf32>
    %cst = arith.constant dense<0.000000e+00> : vector<8x32xf32>
    %7 = tpu.matmul %1, %6, %cst {dimension_numbers = #tpu.dot_dimension_numbers<[1], [0], [0], [1], [0, 0, 1, 1], [], []>} : vector<8x32xf32>, vector<32x32xf32>, vector<8x32xf32> -> vector<8x32xf32>
    %c0_10 = arith.constant 0 : index
    %c0_11 = arith.constant 0 : index
    %8 = vector.load %arg9[%c0_10, %c0_11] : memref<1x32xf32, #tpu.memory_space<vmem>>, vector<1x32xf32>
    %9 = vector.broadcast %8 : vector<1x32xf32> to vector<8x32xf32>
    %10 = arith.addf %7, %9 : vector<8x32xf32>
    %cst_12 = arith.constant 0.353553385 : f32
    %11 = vector.broadcast %cst_12 : f32 to vector<8x32xf32>
    %12 = arith.mulf %10, %11 : vector<8x32xf32>
    %c0_13 = arith.constant 0 : index
    %c0_14 = arith.constant 0 : index
    %c0_15 = arith.constant 0 : index
    %13 = vector.load %arg12[%c0_13, %c0_14, %c0_15] : memref<1x8x32xf32, #tpu.memory_space<vmem>>, vector<1x8x32xf32>
    %14 = vector.shape_cast %13 : vector<1x8x32xf32> to vector<8x32xf32>
    %15 = vector.shape_cast %12 : vector<8x32xf32> to vector<1x8x32xf32>
    tpu.vector_store %arg12[%c0_13, %c0_14, %c0_15], %15 {strides = array<i32>} : memref<1x8x32xf32, #tpu.memory_space<vmem>>, vector<1x8x32xf32>,
    %c0_16 = arith.constant 0 : index
    %c0_17 = arith.constant 0 : index
    %16 = vector.load %arg7[%c0_16, %c0_17] : memref<32x32xf32, #tpu.memory_space<vmem>>, vector<32x32xf32>
    %cst_18 = arith.constant dense<0.000000e+00> : vector<8x32xf32>
    %17 = tpu.matmul %3, %16, %cst_18 {dimension_numbers = #tpu.dot_dimension_numbers<[1], [0], [0], [1], [0, 0, 1, 1], [], []>} : vector<8x32xf32>, vector<32x32xf32>, vector<8x32xf32> -> vector<8x32xf32>
    %c0_19 = arith.constant 0 : index
    %c0_20 = arith.constant 0 : index
    %18 = vector.load %arg10[%c0_19, %c0_20] : memref<1x32xf32, #tpu.memory_space<vmem>>, vector<1x32xf32>
    %19 = vector.broadcast %18 : vector<1x32xf32> to vector<8x32xf32>
    %20 = arith.addf %17, %19 : vector<8x32xf32>
    %c0_21 = arith.constant 0 : index
    %c0_22 = arith.constant 0 : index
    %c0_23 = arith.constant 0 : index
    %21 = vector.load %arg13[%c0_21, %c0_22, %c0_23] : memref<1x8x32xf32, #tpu.memory_space<vmem>>, vector<1x8x32xf32>
    %22 = vector.shape_cast %21 : vector<1x8x32xf32> to vector<8x32xf32>
    %23 = vector.shape_cast %20 : vector<8x32xf32> to vector<1x8x32xf32>
    tpu.vector_store %arg13[%c0_21, %c0_22, %c0_23], %23 {strides = array<i32>} : memref<1x8x32xf32, #tpu.memory_space<vmem>>, vector<1x8x32xf32>,
    %c0_24 = arith.constant 0 : index
    %c0_25 = arith.constant 0 : index
    %24 = vector.load %arg8[%c0_24, %c0_25] : memref<32x32xf32, #tpu.memory_space<vmem>>, vector<32x32xf32>
    %cst_26 = arith.constant dense<0.000000e+00> : vector<8x32xf32>
    %25 = tpu.matmul %5, %24, %cst_26 {dimension_numbers = #tpu.dot_dimension_numbers<[1], [0], [0], [1], [0, 0, 1, 1], [], []>} : vector<8x32xf32>, vector<32x32xf32>, vector<8x32xf32> -> vector<8x32xf32>
    %c0_27 = arith.constant 0 : index
    %c0_28 = arith.constant 0 : index
    %26 = vector.load %arg11[%c0_27, %c0_28] : memref<1x32xf32, #tpu.memory_space<vmem>>, vector<1x32xf32>
    %27 = vector.broadcast %26 : vector<1x32xf32> to vector<8x32xf32>
    %28 = arith.addf %25, %27 : vector<8x32xf32>
    %c0_29 = arith.constant 0 : index
    %c0_30 = arith.constant 0 : index
    %c0_31 = arith.constant 0 : index
    %29 = vector.load %arg14[%c0_29, %c0_30, %c0_31] : memref<1x8x32xf32, #tpu.memory_space<vmem>>, vector<1x8x32xf32>
    %30 = vector.shape_cast %29 : vector<1x8x32xf32> to vector<8x32xf32>
    %31 = vector.shape_cast %28 : vector<8x32xf32> to vector<1x8x32xf32>
    tpu.vector_store %arg14[%c0_29, %c0_30, %c0_31], %31 {strides = array<i32>} : memref<1x8x32xf32, #tpu.memory_space<vmem>>, vector<1x8x32xf32>,
    return
  }
  func.func @transform_0(%arg0: i32, %arg1: i32, %arg2: i32) -> (i32, i32, i32) {
    %c0_i32 = arith.constant 0 : i32
    %c0_i32_0 = arith.constant 0 : i32
    return %arg0, %arg2, %c0_i32 : i32, i32, i32
  }
  func.func @transform_1(%arg0: i32, %arg1: i32, %arg2: i32) -> (i32, i32, i32) {
    %c0_i32 = arith.constant 0 : i32
    %c0_i32_0 = arith.constant 0 : i32
    return %arg0, %arg2, %c0_i32 : i32, i32, i32
  }
  func.func @transform_2(%arg0: i32, %arg1: i32, %arg2: i32) -> (i32, i32, i32) {
    %c0_i32 = arith.constant 0 : i32
    %c0_i32_0 = arith.constant 0 : i32
    return %arg0, %arg2, %c0_i32 : i32, i32, i32
  }
  func.func @transform_3(%arg0: i32, %arg1: i32, %arg2: i32) -> (i32, i32) {
    %c0_i32 = arith.constant 0 : i32
    %c0_i32_0 = arith.constant 0 : i32
    return %c0_i32, %arg1 : i32, i32
  }
  func.func @transform_4(%arg0: i32, %arg1: i32, %arg2: i32) -> (i32, i32) {
    %c0_i32 = arith.constant 0 : i32
    %c0_i32_0 = arith.constant 0 : i32
    return %c0_i32, %arg1 : i32, i32
  }
  func.func @transform_5(%arg0: i32, %arg1: i32, %arg2: i32) -> (i32, i32) {
    %c0_i32 = arith.constant 0 : i32
    %c0_i32_0 = arith.constant 0 : i32
    return %c0_i32, %arg1 : i32, i32
  }
  func.func @transform_6(%arg0: i32, %arg1: i32, %arg2: i32) -> (i32, i32) {
    %c0_i32 = arith.constant 0 : i32
    %c0_i32_0 = arith.constant 0 : i32
    return %c0_i32, %arg1 : i32, i32
  }
  func.func @transform_7(%arg0: i32, %arg1: i32, %arg2: i32) -> (i32, i32) {
    %c0_i32 = arith.constant 0 : i32
    %c0_i32_0 = arith.constant 0 : i32
    return %c0_i32, %arg1 : i32, i32
  }
  func.func @transform_8(%arg0: i32, %arg1: i32, %arg2: i32) -> (i32, i32) {
    %c0_i32 = arith.constant 0 : i32
    %c0_i32_0 = arith.constant 0 : i32
    return %c0_i32, %arg1 : i32, i32
  }
  func.func @transform_9(%arg0: i32, %arg1: i32, %arg2: i32) -> (i32, i32, i32) {
    %c0_i32 = arith.constant 0 : i32
    return %arg0, %arg2, %arg1 : i32, i32, i32
  }
  func.func @transform_10(%arg0: i32, %arg1: i32, %arg2: i32) -> (i32, i32, i32) {
    %c0_i32 = arith.constant 0 : i32
    return %arg0, %arg2, %arg1 : i32, i32, i32
  }
  func.func @transform_11(%arg0: i32, %arg1: i32, %arg2: i32) -> (i32, i32, i32) {
    %c0_i32 = arith.constant 0 : i32
    return %arg0, %arg2, %arg1 : i32, i32, i32
  }
}

</mosaic_0001>

<bundles_post_ra>
// kernel: tpu_custom_call.1
= control target key start
LH: loop header
LB: loop body
LE: loop exit
PB: predicated region body
PF: predicated region fallthrough
CT: control target
= control target key end

     0   :  { %s2291_s0 = inlined_call_operand.hbm [shape: f32[2,8,32], index: 0, kind: input, shape index: {}]   ;;  %s2292_s1 = inlined_call_operand.hbm [shape: f32[2,8,32], index: 1, kind: input, shape index: {}]   ;;  %s2293_s2 = inlined_call_operand.hbm [shape: f32[2,8,32], index: 2, kind: input, shape index: {}]   ;;  %s2294_s3 = inlined_call_operand.hbm [shape: f32[32,32], index: 3, kind: input, shape index: {}]   ;;  %s2295_s4 = inlined_call_operand.hbm [shape: f32[32,32], index: 4, kind: input, shape index: {}]   ;;  %s2296_s5 = inlined_call_operand.hbm [shape: f32[32,32], index: 5, kind: input, shape index: {}]   ;;  %s2297_s6 = inlined_call_operand.vmem [shape: f32[1,32], index: 6, kind: input, shape index: {}]   ;;  %s2298_s7 = inlined_call_operand.vmem [shape: f32[1,32], index: 7, kind: input, shape index: {}]   ;;  %s2299_s8 = inlined_call_operand.vmem [shape: f32[1,32], index: 8, kind: input, shape index: {}]   ;;  %s2300_s9 = inlined_call_operand.hbm [shape: f32[2,8,32], index: 9, kind: output, shape index: {0}]   ;;  %s2301_s10 = inlined_call_operand.hbm [shape: f32[2,8,32], index: 10, kind: output, shape index: {1}]   ;;  %s2302_s11 = inlined_call_operand.hbm [shape: f32[2,8,32], index: 11, kind: output, shape index: {2}]  }
   0x1   :  { %2332 = sst [smem:[#allocation30_spill]] %s2292_s1 }
   0x2   :  { %2333 = sst [smem:[#allocation31_spill]] %s2294_s3 }
   0x3   :  { %2334 = sst [smem:[#allocation32_spill]] %s2297_s6 }
   0x4   :  { %2335 = sst [smem:[#allocation33_spill]] %s2298_s7 }
   0x5   :  { %2336 = sst [smem:[#allocation34_spill]] %s2299_s8 }
   0x6   :  { %2337 = sst [smem:[#allocation35_spill]] %s2300_s9 }
   0x7   :  { %2338 = sst [smem:[#allocation36_spill]] %s2301_s10 }
   0x8   :  { %2339 = sst [smem:[#allocation37_spill]] %s2302_s11 }
   0x9   :  { %17 = vsyncpa [#allocation3], 0 }
   0xa   :  { %19 = vsyncpa [#allocation3 + $0x1], 0 }
   0xb   :  { %20 = vsyncpa [#allocation6], 0 }
   0xc   :  { %22 = vsyncpa [#allocation6 + $0x1], 0 }
   0xd   :  { %23 = vsyncpa [#allocation9], 0 }
   0xe   :  { %24 = vsyncpa [#allocation12], 0 }
   0xf   :  { %25 = vsyncpa [#allocation4], 0 }
  0x10   :  { %27 = vsyncpa [#allocation4 + $0x1], 0 }
  0x11   :  { %28 = vsyncpa [#allocation15], 0 }
  0x12   :  { %30 = vsyncpa [#allocation15 + $0x1], 0  ;;  %s1847_s17 = smov 0   ;;  %s1849_s18 = smov 0  }
  0x13   :  { %s1851_s19 = smov 0   ;;  %s1853_s20 = smov 0  }
  0x14   :  { %s1855_s21 = smov 0   ;;  %s1857_s22 = smov 0  }
  0x15 LB: > { %2340 = sst [smem:[#allocation23_spill]] %s1751_s17  ;;  %s1878_s23 = sadd.s32 4294967295, %s1771_s22   ;;  %s1771_s22 = sphi %s1857_s22, %s36_s22   ;;  %s1767_s21 = sphi %s1855_s21, %s2389_s21   ;;  %s1763_s20 = sphi %s1853_s20, %s2388_s20   ;;  %s1759_s19 = sphi %s1851_s19, %s2392_s19   ;;  %s1755_s18 = sphi %s1849_s18, %s2391_s18   ;;  %s1751_s17 = sphi %s1847_s17, %s2390_s17  }
  0x16   : > { %2341 = sst [smem:[#allocation24_spill]] %s1767_s21  ;;  %s2303_s24 = sadd.s32 4294967294, %s1771_s22  }
  0x17   : > { %2342 = sst [smem:[#allocation25_spill]] %s1771_s22  ;;  %p77_p0 = scmp.ne.s32.totalorder %s1755_s18, %s1751_s17 }
  0x18   : > { %p2306_p1 = scmp.eq.s32.totalorder %s1878_s23, 0  ;;  %p323_p3 = scmp.eq.s32.totalorder %s2303_s24, 1 }
  0x19   : > { %p1221_p5 = scmp.ge.s32.totalorder %s1771_s22, 1  ;;  %p390_p7 = scmp.lt.s32.totalorder %s1771_s22, 3 }
  0x1a   : > { %p1889_p4 = por %p2306_p1, %p77_p0  ;;  %p1894_p6 = por %p323_p3, %p77_p0 }
  0x1b   : > { %p1899_p8 = pnand %p1221_p5, %p390_p7  ;;  %s1773_s28 = smov [#allocation8]  }
  0x1c   : > { %s2343_s25 = scalar_select %p1889_p4, 1, 0 }
  0x1d   : > { %s2344_s26 = scalar_select %p1894_p6, 1, 0 }
  0x1e   : > { %s2346_s27 = scalar_select %p1899_p8, 1, 0 }
  0x1f   : > { %2345 = sst [smem:[#allocation26_spill]] %s2344_s26  ;;  %s404_s29 = sshll.u32 %s1773_s28, 4  ;;  %s405_s29 = int_to_ptr.vmem [resolvable:$true] %s404_s29 }
  0x20   : > { %p1349_p9 = pneg %p1899_p8  ;;  %s55_s12 = sadd.s32 1, %s1767_s21 }
  0x21   : > { %s2348_s3 = sld [smem:[#allocation31_spill]] }
  0x22   : > { %p1908_p11 = pnand %p1349_p9, %p2306_p1 }
  0x24   : > { %s2347_s30 = scalar_select %p1908_p11, 1, 0 }
  0x25   : > { %p1921_p13 = pneg %p1908_p11 }
  0x27   : > { %s1443_s15 = scalar_lea.hbm %s2348_s3, 512 }
  0x28   : > { %p1444_p12 = scmp.ne.s32.totalorder %s2348_s3, %s1443_s15  ;;  %p1450_p5 = scmp.lt.u32.totalorder %s1443_s15, %s2348_s3 }
  0x29   : > { %s2349_s28 = scalar_select %p1921_p13, 1, 0 }
  0x2a   : > { %p1446_p0 = pnand %p1921_p13, %p1444_p12 }
  0x2c   : > { %p1447_p3 = pneg %p1446_p0 }
  0x2e   : > { %p1452_p7 = pnand %p1450_p5, %p1447_p3 }
  0x30   : > { %1455 = shalt.err (!%p1452_p7)
}
  0x31   : > { %s1456_s13 = scalar_lea.vmem %s405_s29, 512  ;;  %p1464_p2 = scmp.lt.s32.totalorder %s405_s29, %s405_s29 }
  0x32   : > { %p1457_p9 = scmp.ne.s32.totalorder %s405_s29, %s1456_s13  ;;  %p1465_p6 = scmp.lt.s32.totalorder %s1456_s13, %s1456_s13 }
  0x34   : > { %p1459_p10 = pnand %p1457_p9, %p1921_p13  ;;  %p1466_p4 = por %p1465_p6, %p1464_p2 }
  0x36   : > { %p1460_p1 = pneg %p1459_p10 }
  0x38   : > { %p1467_p8 = pnand %p1466_p4, %p1460_p1 }
  0x3a   : > { %1470 = shalt.err (!%p1467_p8)
}
  0x3b   : > { %s2310_s24 = smov 128   ;;  %s2312_s17 = smov 8  }
  0x3c   : > { %1352 = dma.hbm_to_vmem [thread:$0]  (!%p1908_p11), %s2348_s3, 512, %s405_s29, [#allocation9], %s2310_s24, %s2310_s24, %s2312_s17  }
  0x3d   : > { %p57_p1 = scmp.ge.s32.totalorder %s55_s12, 2  ;;  %s64_s15 = sadd.s32 1, %s1759_s19 }
  0x3e   : > { %p71_p2 = scmp.ne.s32.totalorder %s1759_s19, %s1755_s18  ;;  %p72_p4 = scmp.eq.s32.totalorder %s1771_s22, 0 }
  0x3f   : > { %s2394_s12 = smov (%p57_p1, %s55_s12), 0  ;;  %p2351_p8 = scmp.eq.s32.totalorder %s1878_s23, 1 }
  0x40   : > { %2350 = sst [smem:[#allocation27_spill]] %s2394_s12  ;;  %p73_p6 = por %p72_p4, %p71_p2 }
  0x41   : > { %p1948_p10 = por %p2351_p8, %p71_p2  ;;  %s59_s13 = ssub.s32 %s1767_s21, %s2394_s12 }
  0x42   : > { %p1382_p12 = scmp.lt.s32.totalorder %s1771_s22, 2  ;;  %p62_p0 = scmp.eq.s32.totalorder %s59_s13, 0 }
  0x43   : > { %s2352_s16 = scalar_select %p1948_p10, 1, 0 }
  0x44   : > { %s2315_s11 = sand.u32 1, %s1759_s19   ;;  %s1961_s26 = sshll.u32 %s1767_s21, 7 }
  0x45   : > { %2353 = sst [smem:[#allocation28_spill]] %s2352_s16  ;;  %s1958_s29 = sshll.u32 %s2315_s11, 3 }
  0x46   : > { %s1964_s14 = scalar_select %p62_p0, %s1759_s19, %s64_s15  }
  0x47   : > { %p1966_p3 = pnand %p1382_p12, %p73_p6  ;;  %s485_s17 = sand.u32 1, %s1771_s22  }
  0x48   : > { %2354 = sst [smem:[#allocation29_spill]] %s1964_s14  ;;  %s2356_s1 = sld [smem:[#allocation30_spill]] }
  0x49   : > { %s2355_s24 = scalar_select %p1966_p3, 1, 0 }
  0x4a   : > { %s489_s11 = scalar_lea.vmem [#allocation5], %s1958_s29  ;;  %s1776_s15 = smov [#allocation10]  }
  0x4b   : > { %s497_s21 = sshll.u32 %s489_s11, 4  ;;  %s1980_s14 = sshll.u32 %s1776_s15, 4  ;;  %s1978_s21 = int_to_ptr.vmem [resolvable:$true] %s497_s21  ;;  %s420_s14 = int_to_ptr.vmem [resolvable:$true] %s1980_s14 }
  0x4c   : > { %s1982_s8 = scalar_lea.sflag [#allocation6], %s485_s17  ;;  %p1988_p7 = pneg %p1966_p3 }
  0x4e   : > { %s1975_s13 = scalar_lea.hbm %s2356_s1, %s1961_s26  ;;  %s1476_s22 = scalar_lea.hbm %s2356_s1, 256 }
  0x4f   : > { %s1471_s9 = scalar_lea.hbm %s1975_s13, 128  ;;  %p1477_p2 = scmp.lt.u32.totalorder %s1975_s13, %s2356_s1 }
  0x50   : > { %p1472_p5 = scmp.ne.s32.totalorder %s1975_s13, %s1471_s9  ;;  %p1478_p4 = scmp.lt.u32.totalorder %s1476_s22, %s1471_s9 }
  0x51   : > { %s2357_s3 = scalar_select %p1988_p7, 1, 0 }
  0x52   : > { %p1474_p9 = pnand %p1988_p7, %p1472_p5  ;;  %p1479_p6 = por %p1478_p4, %p1477_p2 }
  0x53   : > { %p1480_p8 = scmp.lt.u32.totalorder %s1471_s9, %s1975_s13 }
  0x54   : > { %p1475_p1 = pneg %p1474_p9 }
  0x55   : > { %p1481_p12 = por %p1480_p8, %p1479_p6 }
  0x57   : > { %p1482_p0 = pnand %p1481_p12, %p1475_p1 }
  0x59   : > { %1485 = shalt.err (!%p1482_p0)
}
  0x5a   : > { %s1486_s17 = scalar_lea.vmem %s1978_s21, 128  ;;  %s1777_s12 = smov [#allocation5]  }
  0x5b   : > { %p1487_p5 = scmp.ne.s32.totalorder %s1978_s21, %s1486_s17  ;;  %s1491_s11 = sshll.u32 %s1777_s12, 4  ;;  %s1492_s11 = int_to_ptr.vmem [resolvable:$false] %s1491_s11 }
  0x5c   : > { %s1493_s10 = scalar_lea.vmem %s1492_s11, 256  ;;  %p1494_p11 = scmp.lt.s32.totalorder %s1978_s21, %s1492_s11 }
  0x5d   : > { %p1489_p9 = pnand %p1487_p5, %p1988_p7  ;;  %p1495_p13 = scmp.lt.s32.totalorder %s1493_s10, %s1486_s17 }
  0x5f   : > { %p1490_p10 = pneg %p1489_p9  ;;  %p1496_p2 = por %p1495_p13, %p1494_p11 }
  0x61   : > { %p1497_p4 = pnand %p1496_p2, %p1490_p10 }
  0x63   : > { %1500 = shalt.err (!%p1497_p4)
}
  0x64   : > { %1365 = dma.hbm_to_vmem [thread:$0]  (!%p1966_p3), %s1975_s13, 128, %s1978_s21, %s1982_s8  }
  0x65   : > { %s1501_s15 = scalar_lea.hbm %s2295_s4, 512  ;;  %p2358_p11 = scmp.ne.s32.totalorder %s2349_s28, 0 }
  0x66   : > { %p1502_p1 = scmp.ne.s32.totalorder %s2295_s4, %s1501_s15  ;;  %p1508_p6 = scmp.lt.u32.totalorder %s1501_s15, %s2295_s4 }
  0x68   : > { %p1504_p13 = pnand %p1502_p1, %p2358_p11 }
  0x6a   : > { %p1505_p10 = pneg %p1504_p13 }
  0x6c   : > { %p1510_p8 = pnand %p1508_p6, %p1505_p10 }
  0x6e   : > { %1513 = shalt.err (!%p1510_p8)
}
  0x6f   : > { %s1514_s10 = scalar_lea.vmem %s420_s14, 512  ;;  %p1522_p9 = scmp.lt.s32.totalorder %s420_s14, %s420_s14 }
  0x70   : > { %p1515_p12 = scmp.ne.s32.totalorder %s420_s14, %s1514_s10  ;;  %p1523_p2 = scmp.lt.s32.totalorder %s1514_s10, %s1514_s10 }
  0x72   : > { %p1517_p0 = pnand %p1515_p12, %p2358_p11  ;;  %p1524_p4 = por %p1523_p2, %p1522_p9 }
  0x74   : > { %p1518_p5 = pneg %p1517_p0 }
  0x76   : > { %p1525_p3 = pnand %p1524_p4, %p1518_p5 }
  0x78   : > { %1528 = shalt.err (!%p1525_p3)
}
  0x79   : > { %p2359_p1 = scmp.ne.s32.totalorder %s2347_s30, 0  ;;  %s2360_s1 = smov 8  }
  0x7a   : > { %s2361_s21 = smov 128   ;;  %s1778_s22 = smov [#allocation11]  }
  0x7b   : > { %1355 = dma.hbm_to_vmem [thread:$0]  (!%p2359_p1), %s2295_s4, 512, %s420_s14, [#allocation9], %s2361_s21, %s2361_s21, %s2360_s1  }
  0x7c   : > { %s434_s15 = sshll.u32 %s1778_s22, 4  ;;  %s1529_s11 = scalar_lea.hbm %s2296_s5, 512  ;;  %s435_s15 = int_to_ptr.vmem [resolvable:$true] %s434_s15 }
  0x7d   : > { %p1530_p3 = scmp.ne.s32.totalorder %s2296_s5, %s1529_s11  ;;  %p1536_p6 = scmp.lt.u32.totalorder %s1529_s11, %s2296_s5 }
  0x7f   : > { %p1532_p13 = pnand %p1530_p3, %p2358_p11 }
  0x81   : > { %p1533_p10 = pneg %p1532_p13 }
  0x83   : > { %p1538_p8 = pnand %p1536_p6, %p1533_p10 }
  0x85   : > { %1541 = shalt.err (!%p1538_p8)
}
  0x86   : > { %s1542_s14 = scalar_lea.vmem %s435_s15, 512  ;;  %p1550_p9 = scmp.lt.s32.totalorder %s435_s15, %s435_s15 }
  0x87   : > { %p1543_p12 = scmp.ne.s32.totalorder %s435_s15, %s1542_s14  ;;  %p1551_p2 = scmp.lt.s32.totalorder %s1542_s14, %s1542_s14 }
  0x89   : > { %p1545_p0 = pnand %p1543_p12, %p2358_p11  ;;  %p1552_p4 = por %p1551_p2, %p1550_p9 }
  0x8b   : > { %p1546_p5 = pneg %p1545_p0 }
  0x8d   : > { %p1553_p7 = pnand %p1552_p4, %p1546_p5 }
  0x8f   : > { %1556 = shalt.err (!%p1553_p7)
}
  0x90   : > { %1358 = dma.hbm_to_vmem [thread:$0]  (!%p2359_p1), %s2296_s5, 512, %s435_s15, [#allocation12], %s2361_s21, %s2361_s21, %s2360_s1  }
  0x91   : > { %s2059_s13 = scalar_lea.hbm %s2291_s0, %s1961_s26  ;;  %s470_s30 = scalar_lea.vmem [#allocation2], %s1958_s29 }
  0x92   : > { %s478_s9 = sshll.u32 %s470_s30, 4  ;;  %s2362_s22 = sand.u32 1, %s1759_s19   ;;  %s479_s9 = int_to_ptr.vmem [resolvable:$true] %s478_s9 }
  0x93   : > { %s467_s12 = scalar_lea.sflag [#allocation3], %s2362_s22  ;;  %s1557_s17 = scalar_lea.hbm %s2059_s13, 128 }
  0x94   : > { %p1558_p7 = scmp.ne.s32.totalorder %s2059_s13, %s1557_s17  ;;  %p2363_p11 = scmp.ne.s32.totalorder %s2357_s3, 0 }
  0x95   : > { %s1562_s15 = scalar_lea.hbm %s2291_s0, 256  ;;  %p1563_p1 = scmp.lt.u32.totalorder %s2059_s13, %s2291_s0 }
  0x96   : > { %p1560_p3 = pnand %p1558_p7, %p2363_p11  ;;  %p1564_p10 = scmp.lt.u32.totalorder %s1562_s15, %s1557_s17 }
  0x97   : > { %p1566_p8 = scmp.lt.u32.totalorder %s1557_s17, %s2059_s13 }
  0x98   : > { %p1561_p13 = pneg %p1560_p3  ;;  %p1565_p6 = por %p1564_p10, %p1563_p1 }
  0x9a   : > { %p1567_p12 = por %p1566_p8, %p1565_p6 }
  0x9c   : > { %p1568_p0 = pnand %p1567_p12, %p1561_p13 }
  0x9e   : > { %1571 = shalt.err (!%p1568_p0)
}
  0x9f   : > { %s1572_s14 = scalar_lea.vmem %s479_s9, 128  ;;  %s1779_s6 = smov [#allocation2]  }
  0xa0   : > { %p1573_p5 = scmp.ne.s32.totalorder %s479_s9, %s1572_s14  ;;  %s1577_s7 = sshll.u32 %s1779_s6, 4  ;;  %s1578_s7 = int_to_ptr.vmem [resolvable:$false] %s1577_s7 }
  0xa1   : > { %s1579_s28 = scalar_lea.vmem %s1578_s7, 256  ;;  %p1580_p4 = scmp.lt.s32.totalorder %s479_s9, %s1578_s7 }
  0xa2   : > { %p1575_p9 = pnand %p1573_p5, %p2363_p11  ;;  %p1581_p7 = scmp.lt.s32.totalorder %s1579_s28, %s1572_s14 }
  0xa4   : > { %p1576_p2 = pneg %p1575_p9  ;;  %p1582_p3 = por %p1581_p7, %p1580_p4 }
  0xa6   : > { %p1583_p1 = pnand %p1582_p3, %p1576_p2 }
  0xa8   : > { %1586 = shalt.err (!%p1583_p1)
}
  0xa9   : > { %p2364_p10 = scmp.ne.s32.totalorder %s2355_s24, 0  ;;  %s2085_s22 = scalar_lea.hbm %s2293_s2, %s1961_s26 }
  0xaa   : > { %s508_s17 = scalar_lea.vmem [#allocation7], %s1958_s29  ;;  %s1587_s21 = scalar_lea.hbm %s2085_s22, 128 }
  0xab   : > { %1362 = dma.hbm_to_vmem [thread:$0]  (!%p2364_p10), %s2059_s13, 128, %s479_s9, %s467_s12  }
  0xac   : > { %s516_s1 = sshll.u32 %s508_s17, 4  ;;  %p1588_p13 = scmp.ne.s32.totalorder %s2085_s22, %s1587_s21  ;;  %s517_s1 = int_to_ptr.vmem [resolvable:$true] %s516_s1 }
  0xad   : > { %s1592_s13 = scalar_lea.hbm %s2293_s2, 256  ;;  %p1593_p12 = scmp.lt.u32.totalorder %s2085_s22, %s2293_s2 }
  0xae   : > { %p1590_p6 = pnand %p1588_p13, %p2363_p11  ;;  %p1594_p0 = scmp.lt.u32.totalorder %s1592_s13, %s1587_s21 }
  0xaf   : > { %p1596_p9 = scmp.lt.u32.totalorder %s1587_s21, %s2085_s22 }
  0xb0   : > { %p1591_p8 = pneg %p1590_p6  ;;  %p1595_p5 = por %p1594_p0, %p1593_p12 }
  0xb2   : > { %p1597_p2 = por %p1596_p9, %p1595_p5 }
  0xb4   : > { %p1598_p4 = pnand %p1597_p2, %p1591_p8 }
  0xb6   : > { %1601 = shalt.err (!%p1598_p4)
}
  0xb7   : > { %s1602_s29 = scalar_lea.vmem %s517_s1, 128  ;;  %s1780_s26 = smov [#allocation7]  }
  0xb8   : > { %p1603_p7 = scmp.ne.s32.totalorder %s517_s1, %s1602_s29  ;;  %s1607_s10 = sshll.u32 %s1780_s26, 4  ;;  %s1608_s10 = int_to_ptr.vmem [resolvable:$false] %s1607_s10 }
  0xb9   : > { %s1609_s14 = scalar_lea.vmem %s1608_s10, 256  ;;  %p1610_p13 = scmp.lt.s32.totalorder %s517_s1, %s1608_s10 }
  0xba   : > { %p1605_p3 = pnand %p1603_p7, %p2363_p11  ;;  %p1611_p6 = scmp.lt.s32.totalorder %s1609_s14, %s1602_s29 }
  0xbc   : > { %p1606_p1 = pneg %p1605_p3  ;;  %p1612_p10 = por %p1611_p6, %p1610_p13 }
  0xbe   : > { %p1613_p0 = pnand %p1612_p10, %p1606_p1 }
  0xc0   : > { %1616 = shalt.err (!%p1613_p0)
}
  0xc1   : > { %p2365_p12 = scmp.ne.s32.totalorder %s2355_s24, 0  ;;  %p2366_p8 = scmp.ne.s32.totalorder %s2346_s27, 0 }
  0xc2   : > { %s2109_s3 = sand.u32 (!%p2366_p8), 1, %s1755_s18   ;;  %p2367_p11 = scmp.ne.s32.totalorder (!%p2366_p8), %s2343_s25, 0 }
  0xc3   : > { %1368 = dma.hbm_to_vmem [thread:$0]  (!%p2365_p12), %s2085_s22, 128, %s517_s1, %s1982_s8  }
  0xc4   : > { %525 = sbr.rel (%p2366_p8) target bundleno = 501 (0x1f5), region = 56  ;;  %s2112_s6 = sshll.u32 (!%p2366_p8), %s2109_s3, 3 }
  0xc5   : > { %s528_s7 = scalar_lea.sflag (!%p2366_p8), [#allocation3], %s2109_s3  ;;  %s531_s28 = scalar_lea.vmem (!%p2366_p8), [#allocation2], %s2112_s6 }
  0xcb   : > { %1726 = dma.done.wait (%p2367_p11), %s528_s7, 128  }
  0xcc   : > { %1728 = vsyncadd (%p2367_p11), %s528_s7, 4294967168  ;;  %s536_s8 = sand.u32 1, %s1878_s23   ;;  %s540_s24 = scalar_lea.vmem [#allocation5], %s2112_s6 }
  0xcd   : > { %s537_s27 = scalar_lea.sflag [#allocation6], %s536_s8 }
  0xce   : > { %1730 = dma.done.wait (%p2367_p11), %s537_s27, 256  }
  0xcf   : > { %1732 = vsyncadd (%p2367_p11), %s537_s27, 4294967040  ;;  %s549_s16 = scalar_lea.vmem [#allocation7], %s2112_s6  ;;  %p2368_p10 = scmp.eq.s32.totalorder %s1878_s23, 0 }
  0xd1   : > { %1734 = dma.done.wait (%p2368_p10), [#allocation9], 1024   ;;  %p2369_p5 = pmov %p2368_p10 }
  0xd3   : > { %1736 = vsyncadd (%p2369_p5), [#allocation9], 4294966272  ;;  %p2370_p9 = pmov %p2369_p5 }
  0xd4   : > { %p2371_p2 = pmov %p2369_p5 }
  0xd5   : > { %1738 = dma.done.wait (%p2370_p9), [#allocation12], 512  }
  0xd6   : > { %1740 = vsyncadd (%p2371_p2), [#allocation12], 4294966784  ;;  %v1781_v0 = vmov 0.0|0.0   ;;  %vm1782_vm0 = vmmov 0   ;;  %v1783_v1 = vmov 0.0   ;;  %v641_v2 = vld [vmem:[#allocation8] sm:$0xff] }
  0xd7   : > { %1307 = vmatprep.subr.bf16.mxu0 %v1781_v0  ;;  %1313 = vmatprep.subr.bf16.mxu1 %v1781_v0  ;;  %v642_v3 = vld [vmem:[#allocation8 + $0x8] sm:$0xff]  ;;  %v643_v4 = vld [vmem:[#allocation8 + $0x10] sm:$0xff]  ;;  %v644_v6 = vld [vmem:[#allocation8 + $0x18] sm:$0xff]  ;;  %vm652_vm1 = vcmask 261120   ;;  %s2372_s22 = sld [smem:[#allocation32_spill]]  ;;  %s2153_s17 = sshll.u32 %s1763_s20, 7 }
  0xd8   : > { %1282 = vmatprep.mubr.msk.f32.mxu0 %vm1782_vm0, %v1783_v1  ;;  %1293 = vmatprep.mubr.msk.f32.mxu1 %vm1782_vm0, %v1783_v1  ;;  %v1308_v5 = vpack.c.bf16 %v642_v3, %v641_v2  ;;  %v728_v7 = vld [vmem:[#allocation10] sm:$0xff]  ;;  %v729_v8 = vld [vmem:[#allocation10 + $0x8] sm:$0xff]  ;;  %v1311_v10 = vpack.c.bf16 %v644_v6, %v643_v4  ;;  %v730_v11 = vld [vmem:[#allocation10 + $0x10] sm:$0xff]  ;;  %s2373_s15 = sld [smem:[#allocation33_spill]]  ;;  %s621_s11 = scalar_lea.vmem [#allocation14], %s2112_s6 }
  0xd9   : > { %v1314_v9 = vpack.c.bf16 %v729_v8, %v728_v7  ;;  %v731_v12 = vld [vmem:[#allocation10 + $0x18] sm:$0xff]  ;;  %v813_v13 = vld [vmem:[#allocation11] sm:$0xff]  ;;  %v814_v14 = vld [vmem:[#allocation11 + $0x8] sm:$0xff]  ;;  %s939_s13 = sshll.u32 %s621_s11, 4  ;;  %s614_s9 = scalar_lea.vmem [#allocation13], %s2112_s6  ;;  %s2168_s13 = int_to_ptr.vmem [resolvable:$true] %s939_s13 }
  0xda   : > { %1309 = vmatpush3.bf16.msra.mxu0 %v1308_v5  ;;  %v1317_v15 = vpack.c.bf16 %v731_v12, %v730_v11  ;;  %v638_v16 = vld [vmem:[%s531_s28] sm:$0xff]  ;;  %v1320_v17 = vpack.c.bf16 %v814_v14, %v813_v13  ;;  %v639_v20 = vld [vmem:[%s540_s24] sm:$0xff]  ;;  %s924_s12 = sshll.u32 %s614_s9, 4  ;;  %s2374_s29 = sld [smem:[#allocation28_spill]]  ;;  %s2176_s12 = int_to_ptr.vmem [resolvable:$true] %s924_s12 }
  0xdb   : > { %1310 = vmatprep.subr.bf16.mxu0 %v1781_v0  ;;  %1315 = vmatpush3.bf16.msra.mxu1 %v1314_v9  ;;  %v815_v18 = vld [vmem:[#allocation11 + $0x10] sm:$0xff]  ;;  %v816_v19 = vld [vmem:[#allocation11 + $0x18] sm:$0xff]  ;;  %s2375_s10 = sld [smem:[#allocation36_spill]]  ;;  %s2376_s27 = sld [smem:[#allocation35_spill]] }
  0xdc   : > { %1316 = vmatprep.subr.bf16.mxu1 %v1781_v0  ;;  %v1323_v21 = vpack.c.bf16 %v816_v19, %v815_v18  ;;  %v640_v22 = vld [vmem:[%s549_s16] sm:$0xff]  ;;  %s628_s16 = scalar_lea.vmem [#allocation16], %s2112_s6  ;;  %s2186_s30 = scalar_lea.sflag [#allocation15], %s536_s8 }
  0xdd   : > { %v1245_v23 = vld [vmem:[%s2372_s22] ss:$0 sm:$0xff]  ;;  %s2182_s25 = sshll.u32 %s628_s16, 4  ;;  %s1617_s22 = scalar_lea.vmem %s2168_s13, 128  ;;  %s955_s25 = int_to_ptr.vmem [resolvable:$true] %s2182_s25 }
  0xde   : > { %1312 = vmatpush3.bf16.msra.mxu0 %v1311_v10  ;;  %v1247_v24 = vld [vmem:[%s2373_s15] ss:$0 sm:$0xff]  ;;  %p1618_p4 = scmp.ne.s32.totalorder %s2168_s13, %s1617_s22  ;;  %s1784_s1 = smov [#allocation14]  }
  0xdf   : > { %1319 = vmatprep.subr.bf16.mxu0 %v1781_v0  ;;  %1318 = vmatpush3.bf16.msra.mxu1 %v1317_v15  ;;  %s1621_s21 = sshll.u32 %s1784_s1, 4  ;;  %s1622_s21 = int_to_ptr.vmem [resolvable:$false] %s1621_s21 }
  0xe0   : > { %p2377_p7 = scmp.ne.s32.totalorder %s2374_s29, 0  ;;  %s1623_s15 = scalar_lea.vmem %s1622_s21, 256 }
  0xe1   : > { %1283 = vmatmul.mubr.msk.f32.vlgmr.msra.gmra.mrb[0].mxu0 %vm652_vm1, %v638_v16  ;;  %s2166_s14 = scalar_lea.hbm %s2375_s10, %s2153_s17  ;;  %s2174_s24 = scalar_lea.hbm %s2376_s27, %s2153_s17 }
  0xe2   : > { %1321 = vmatpush3.bf16.msra.mxu0 %v1320_v17  ;;  %1294 = vmatmul.mubr.msk.f32.vlgmr.msra.gmra.mrb[0].mxu1 %vm652_vm1, %v639_v20  ;;  %p1619_p3 = pnand %p1618_p4, %p2377_p7  ;;  %p1624_p13 = scmp.lt.s32.totalorder %s2168_s13, %s1622_s21 }
  0xe3   : > { %1322 = vmatprep.subr.bf16.mxu0 %v1781_v0  ;;  %1304 = vmatprep.mubr.msk.f32.mxu0 %vm1782_vm0, %v1783_v1  ;;  %p1625_p6 = scmp.lt.s32.totalorder %s1623_s15, %s1617_s22 }
  0xe4   : > { %p1620_p1 = pneg %p1619_p3 }
  0xe5   : > { %p1626_p0 = por %p1625_p6, %p1624_p13 }
  0xe6   : > { %1324 = vmatpush3.bf16.msra.mxu0 %v1323_v21 }
  0xe7   : > { %p1627_p12 = pnand %p1626_p0, %p1620_p1 }
  0xe9   : > { %1305 = vmatmul.mubr.msk.f32.vlgmr.msra.gmra.mrb[2].mxu0 %vm652_vm1, %v640_v22 }
 0x1b4   : > { %v722_v25 = vpop.f32.mrb[0].mxu0 }
 0x1b5   : > { %v723_v26 = vadd.f32 %v1245_v23, %v722_v25  ;;  %v1284_v27 = vpop.f32.mrb[1].mxu0  ;;  %v808_v28 = vpop.f32.mrb[0].mxu1 }
 0x1b6   : > { %v809_v29 = vadd.f32 %v1247_v24, %v808_v28  ;;  %v1295_v30 = vpop.f32.mrb[1].mxu1 }
 0x1b7   : > { %v726_v31 = vmul.f32 0.35355338, %v723_v26 }
 0x1b8   : > { %812 = vst.msk [vmem:[%s621_s11] sm:$0xff] %vm652_vm1, %v809_v29 }
 0x1b9   : > { %1630 = shalt.err (!%p1627_p12)
}
 0x1ba   : > { %s1631_s23 = scalar_lea.hbm %s2166_s14, 128  ;;  %s1635_s20 = scalar_lea.hbm %s2375_s10, 256 }
 0x1bb   : > { %p1632_p8 = scmp.ne.s32.totalorder %s2166_s14, %s1631_s23  ;;  %p1636_p5 = scmp.lt.u32.totalorder %s2166_s14, %s2375_s10 }
 0x1bc   : > { %p1637_p9 = scmp.lt.u32.totalorder %s1635_s20, %s1631_s23  ;;  %p1639_p4 = scmp.lt.u32.totalorder %s1631_s23, %s2166_s14 }
 0x1bd   : > { %p1633_p11 = pnand %p1632_p8, %p2377_p7 }
 0x1be   : > { %p1638_p2 = por %p1637_p9, %p1636_p5 }
 0x1bf   : > { %p1634_p10 = pneg %p1633_p11 }
 0x1c0   : > { %p1640_p3 = por %p1639_p4, %p1638_p2 }
 0x1c2   : > { %p1641_p1 = pnand %p1640_p3, %p1634_p10 }
 0x1c4   : > { %1644 = shalt.err (!%p1641_p1)
}
 0x1c5   : > { %1344 = dma.vmem_to_hbm [thread:$0]  (%p2377_p7), %s2168_s13, 128, %s2166_s14, %s2186_s30   ;;  %727 = vst.msk [vmem:[%s614_s9] sm:$0xff] %vm652_vm1, %v726_v31 }
 0x1c6   : > { %s2378_s1 = sld [smem:[#allocation34_spill]]  ;;  %s899_s21 = scalar_lea.sflag [#allocation4], %s2109_s3 }
 0x1c7   : > { %s1645_s15 = scalar_lea.vmem %s2176_s12, 128  ;;  %s1785_s23 = smov [#allocation13]  }
 0x1c8   : > { %p1646_p13 = scmp.ne.s32.totalorder %s2176_s12, %s1645_s15  ;;  %s1649_s8 = sshll.u32 %s1785_s23, 4  ;;  %s1650_s8 = int_to_ptr.vmem [resolvable:$false] %s1649_s8 }
 0x1c9   : > { %s1651_s11 = scalar_lea.vmem %s1650_s8, 256  ;;  %p1652_p12 = scmp.lt.s32.totalorder %s2176_s12, %s1650_s8 }
 0x1ca   : > { %p1647_p6 = pnand %p1646_p13, %p2377_p7  ;;  %p1653_p8 = scmp.lt.s32.totalorder %s1651_s11, %s1645_s15 }
 0x1cc   : > { %v1249_v32 = vld [vmem:[%s2378_s1] ss:$0 sm:$0xff]  ;;  %p1648_p0 = pneg %p1647_p6  ;;  %p1654_p11 = por %p1653_p8, %p1652_p12 }
 0x1ce   : > { %p1655_p10 = pnand %p1654_p11, %p1648_p0 }
 0x1d0   : > { %1658 = shalt.err (!%p1655_p10)
}
 0x1d1   : > { %s1659_s3 = scalar_lea.hbm %s2174_s24, 128  ;;  %s1663_s14 = scalar_lea.hbm %s2376_s27, 256 }
 0x1d2   : > { %p1660_p5 = scmp.ne.s32.totalorder %s2174_s24, %s1659_s3  ;;  %p1664_p4 = scmp.lt.u32.totalorder %s2174_s24, %s2376_s27 }
 0x1d3   : > { %p1665_p3 = scmp.lt.u32.totalorder %s1663_s14, %s1659_s3  ;;  %p1667_p13 = scmp.lt.u32.totalorder %s1659_s3, %s2174_s24 }
 0x1d4   : > { %p1661_p9 = pnand %p1660_p5, %p2377_p7 }
 0x1d5   : > { %p1666_p1 = por %p1665_p3, %p1664_p4 }
 0x1d6   : > { %p1662_p2 = pneg %p1661_p9 }
 0x1d7   : > { %p1668_p6 = por %p1667_p13, %p1666_p1 }
 0x1d9   : > { %p1669_p0 = pnand %p1668_p6, %p1662_p2 }
 0x1db   : > { %1672 = shalt.err (!%p1669_p0)
}
 0x1dc   : > { %1343 = dma.vmem_to_hbm [thread:$0]  (%p2377_p7), %s2176_s12, 128, %s2174_s24, %s899_s21   ;;  %v893_v33 = vpop.f32.mrb[2].mxu0 }
 0x1dd   : > { %v894_v34 = vadd.f32 %v1249_v32, %v893_v33  ;;  %v1306_v35 = vpop.f32.mrb[3].mxu0  ;;  %s2379_s22 = sld [smem:[#allocation37_spill]]  ;;  %s1673_s23 = scalar_lea.vmem %s955_s25, 128 }
 0x1de   : > { %p1674_p12 = scmp.ne.s32.totalorder %s955_s25, %s1673_s23  ;;  %s1786_s8 = smov [#allocation16]  }
 0x1df   : > { %897 = vst.msk [vmem:[%s628_s16] sm:$0xff] %vm652_vm1, %v894_v34  ;;  %s1677_s11 = sshll.u32 %s1786_s8, 4  ;;  %s1678_s11 = int_to_ptr.vmem [resolvable:$false] %s1677_s11 }
 0x1e0   : > { %p1675_p8 = pnand %p1674_p12, %p2377_p7  ;;  %s1679_s12 = scalar_lea.vmem %s1678_s11, 256 }
 0x1e1   : > { %p1680_p10 = scmp.lt.s32.totalorder %s955_s25, %s1678_s11  ;;  %p1681_p5 = scmp.lt.s32.totalorder %s1679_s12, %s1673_s23 }
 0x1e2   : > { %p1676_p11 = pneg %p1675_p8 }
 0x1e3   : > { %s2380_s1 = smov %s2379_s22  ;;  %s2242_s15 = scalar_lea.hbm %s2379_s22, %s2153_s17 }
 0x1e4   : > { %p1682_p9 = por %p1681_p5, %p1680_p10 }
 0x1e6   : > { %p1683_p2 = pnand %p1682_p9, %p1676_p11 }
 0x1e8   : > { %1686 = shalt.err (!%p1683_p2)
}
 0x1e9   : > { %s1687_s6 = scalar_lea.hbm %s2242_s15, 128  ;;  %s1691_s16 = scalar_lea.hbm %s2380_s1, 256 }
 0x1ea   : > { %p1688_p4 = scmp.ne.s32.totalorder %s2242_s15, %s1687_s6  ;;  %p1692_p13 = scmp.lt.u32.totalorder %s2242_s15, %s2380_s1 }
 0x1eb   : > { %p1693_p6 = scmp.lt.u32.totalorder %s1691_s16, %s1687_s6  ;;  %p1695_p12 = scmp.lt.u32.totalorder %s1687_s6, %s2242_s15 }
 0x1ec   : > { %p1689_p3 = pnand %p1688_p4, %p2377_p7 }
 0x1ed   : > { %p1694_p0 = por %p1693_p6, %p1692_p13 }
 0x1ee   : > { %p1690_p1 = pneg %p1689_p3 }
 0x1ef   : > { %p1696_p8 = por %p1695_p12, %p1694_p0 }
 0x1f1   : > { %p1697_p11 = pnand %p1696_p8, %p1690_p1 }
 0x1f3   : > { %1700 = shalt.err (!%p1697_p11)
}
 0x1f4   : > { %1345 = dma.vmem_to_hbm [thread:$0]  (%p2377_p7), %s955_s25, 128, %s2242_s15, %s2186_s30  }
 0x1f5 PF: > { %s2381_s13 = sld [smem:[#allocation23_spill]]  ;;  %s2382_s9 = sld [smem:[#allocation26_spill]] }
 0x1f6   : > { %s2383_s14 = sld [smem:[#allocation25_spill]] }
 0x1fb   : > { %s966_s20 = sand.u32 1, %s2381_s13   ;;  %p2384_p10 = scmp.ne.s32.totalorder %s2382_s9, 0 }
 0x1fc   : > { %p2385_p5 = scmp.ge.s32.totalorder %s2383_s14, 2  ;;  %s967_s26 = scalar_lea.sflag [#allocation4], %s966_s20 }
 0x1fe   : > { %p1370_p9 = pnand %p2385_p5, %p2384_p10 }
 0x200   : > { %1742 = dma.done.wait (!%p1370_p9), %s967_s26, 128  }
 0x201   : > { %1744 = vsyncadd (!%p1370_p9), %s967_s26, 4294967168  ;;  %s2386_s7 = sadd.s32 4294967294, %s2383_s14  }
 0x202   : > { %s975_s28 = sand.u32 1, %s2386_s7  }
 0x203   : > { %s976_s22 = scalar_lea.sflag [#allocation15], %s975_s28 }
 0x204   : > { %1746 = dma.done.wait (!%p1370_p9), %s976_s22, 256  }
 0x205   : > { %1748 = vsyncadd (!%p1370_p9), %s976_s22, 4294967040  ;;  %s36_s22 = sadd.s32 1, %s2383_s14   ;;  %s2387_s29 = sld [smem:[#allocation29_spill]] }
 0x206   : > { %p33_p7 = scmp.ge.s32.totalorder %s36_s22, 4   ;;  %s2388_s20 = sld [smem:[#allocation24_spill]] }
 0x207   : > { %s2389_s21 = sld [smem:[#allocation27_spill]]  ;;  %s2390_s17 = smov %s1755_s18 }
 0x208   : > { %s2391_s18 = smov %s1759_s19  ;;  %35 = sbr.rel (!%p33_p7) target bundleno = 21 (0x15), region = 181 }
 0x20b   : > { %s2392_s19 = smov %s2387_s29 }
 0x20f   :  { %990 = vsyncpa [#allocation3], 1 }
 0x210   :  { %992 = vsyncpa [#allocation3 + $0x1], 1 }
 0x211   :  { %993 = vsyncpa [#allocation6], 1 }
 0x212   :  { %995 = vsyncpa [#allocation6 + $0x1], 1 }
 0x213   :  { %996 = vsyncpa [#allocation9], 1 }
 0x214   :  { %997 = vsyncpa [#allocation12], 1 }
 0x215   :  { %998 = vsyncpa [#allocation4], 1 }
 0x216   :  { %1000 = vsyncpa [#allocation4 + $0x1], 1 }
 0x217   :  { %1001 = vsyncpa [#allocation15], 1 }
 0x218   :  { %1003 = vsyncpa [#allocation15 + $0x1], 1 }

</bundles_post_ra>
